<compile_context>
chip_gen: v5e
topology: v5e:2x2
jax: 0.10.0
libtpu: 0.0.40
codegen_flags: <defaults>
</compile_context>

<pallas_src>
import functools

import jax
import jax.numpy as jnp
from jax import lax
from jax.experimental import pallas as pl
from jax.experimental.pallas import tpu as pltpu

_LANE = 128
_MAX_BLOCK_ROWS = 1024  # 1024 x 128 f32 = 512 KiB per input block


def _tversky_sums_kernel(x_ref, t_ref, o_ref, *, rows, block_rows,
                         tiles_per_shard, need_mask):
    s = pl.program_id(0)  # shard axis ("parallel")
    j = pl.program_id(1)  # reduction axis ("arbitrary")

    @pl.when(j == 0)
    def _init():
        o_ref[...] = jnp.zeros_like(o_ref)

    x = x_ref[...].astype(jnp.float32)
    t = t_ref[...].astype(jnp.float32)

    if need_mask:
        # Zero out rows past the valid range (ragged last block / overrun
        # blocks of an uneven shard split).  `rows`, `block_rows`,
        # `tiles_per_shard` are static Python ints.
        start = (s * tiles_per_shard + j) * block_rows
        rid = lax.broadcasted_iota(jnp.int32, x.shape, 0)
        valid = rid < (rows - start)
        x = jnp.where(valid, x, 0.0)
        t = jnp.where(valid, t, 0.0)

    # Sublane-axis partial sums only; the single cross-lane reduce and the
    # scalar loss formula happen outside the kernel.
    o_ref[0, 0] += jnp.sum(x * t, axis=0, keepdims=True)
    o_ref[0, 1] += jnp.sum(x, axis=0, keepdims=True)
    o_ref[0, 2] += jnp.sum(t, axis=0, keepdims=True)


def tversky_loss(inputs, targets, *, alpha=0.5, beta=0.5, smooth=1.0):
    """Pallas TPU Tversky loss. Returns a scalar float32."""
    x = inputs.reshape(-1)
    t = targets.reshape(-1)
    n = x.shape[0]

    # Pad only if the flat length is not lane-aligned (rare; keeps the common
    # path free of an extra full-array HBM pass).
    pad = (-n) % _LANE
    if pad:
        x = jnp.pad(x, (0, pad))
        t = jnp.pad(t, (0, pad))
    rows = (n + pad) // _LANE

    block_rows = min(_MAX_BLOCK_ROWS, rows)
    num_blocks = pl.cdiv(rows, block_rows)
    num_shards = min(2, num_blocks)  # two TensorCores on v7x; harmless elsewhere
    tiles_per_shard = pl.cdiv(num_blocks, num_shards)

    partial_last_block = (num_blocks * block_rows != rows)
    overrun_blocks = (num_shards * tiles_per_shard != num_blocks)
    need_mask = partial_last_block or overrun_blocks

    x2 = x.reshape(rows, _LANE)
    t2 = t.reshape(rows, _LANE)

    if overrun_blocks:
        def in_map(s, j):
            # Clamp so the DMA never walks past the array; the masked kernel
            # contribution of the duplicated block is exactly zero.
            return (jnp.minimum(s * tiles_per_shard + j, num_blocks - 1), 0)
    else:
        def in_map(s, j):
            return (s * tiles_per_shard + j, 0)

    kernel = functools.partial(
        _tversky_sums_kernel,
        rows=rows,
        block_rows=block_rows,
        tiles_per_shard=tiles_per_shard,
        need_mask=need_mask,
    )

    out_bytes = num_shards * 3 * 1 * _LANE * 4
    partials = pl.pallas_call(
        kernel,
        out_shape=jax.ShapeDtypeStruct((num_shards, 3, 1, _LANE), jnp.float32),
        grid_spec=pltpu.PrefetchScalarGridSpec(
            num_scalar_prefetch=0,
            grid=(num_shards, tiles_per_shard),
            in_specs=[
                pl.BlockSpec((block_rows, _LANE), in_map),
                pl.BlockSpec((block_rows, _LANE), in_map),
            ],
            out_specs=pl.BlockSpec((1, 3, 1, _LANE), lambda s, j: (s, 0, 0, 0)),
        ),
        compiler_params=pltpu.CompilerParams(
            dimension_semantics=("parallel", "arbitrary"),
        ),
        cost_estimate=pl.CostEstimate(
            flops=4 * rows * _LANE,
            transcendentals=0,
            bytes_accessed=(x2.size * x2.dtype.itemsize
                            + t2.size * t2.dtype.itemsize
                            + out_bytes),
        ),
    )(x2, t2)

    # Final tiny combine + scalar Tversky formula in plain JAX.
    sums = jnp.sum(partials, axis=(0, 2, 3))  # [sum(x*t), sum(x), sum(t)]
    tp = sums[0]
    fp = sums[1] - tp  # sum((1 - t) * x)
    fn = sums[2] - tp  # sum(t * (1 - x))
    tversky = (tp + smooth) / (tp + alpha * fp + beta * fn + smooth)
    return (1.0 - tversky).astype(jnp.float32)


def _reference(inputs, targets, alpha=0.5, beta=0.5, smooth=1.0):
    x = inputs.reshape(-1).astype(jnp.float32)
    t = targets.reshape(-1).astype(jnp.float32)
    TP = jnp.sum(x * t)
    FP = jnp.sum((1.0 - t) * x)
    FN = jnp.sum(t * (1.0 - x))
    tversky = (TP + smooth) / (TP + alpha * FP + beta * FN + smooth)
    return 1.0 - tversky


if __name__ == "__main__":
    key = jax.random.PRNGKey(0)
    k1, k2 = jax.random.split(key)

    # Segmentation-style shapes: (batch=2, channels=4, H=16, W=16), NCHW.
    inputs = jax.nn.sigmoid(jax.random.normal(k1, (2, 4, 16, 16), jnp.float32))
    targets = (jax.random.uniform(k2, (2, 4, 16, 16)) > 0.5).astype(jnp.float32)

    loss = jax.block_until_ready(tversky_loss(inputs, targets))
    ref = jax.block_until_ready(_reference(inputs, targets))

    assert jnp.allclose(loss, ref, rtol=1e-5, atol=1e-5), (loss, ref)
    print("KERNEL_OK")
</pallas_src>

<mosaic_0001>
module attributes {stable_mosaic.version = 11 : i64} {
  func.func @_tversky_sums_kernel(%arg0: i32, %arg1: i32, %arg2: memref<16x128xf32, #tpu.memory_space<vmem>>, %arg3: memref<16x128xf32, #tpu.memory_space<vmem>>, %arg4: memref<1x3x1x128xf32, #tpu.memory_space<vmem>>) attributes {dimension_semantics = [#tpu.dimension_semantics<parallel>, #tpu.dimension_semantics<arbitrary>], iteration_bounds = array<i64: 1, 1>, scalar_prefetch = 0 : i64, scratch_operands = 0 : i64, tpu.core_type = #tpu.core_type<tc>, window_params = [{transform_indices = @transform_0, window_bounds = array<i64: 16, 128>}, {transform_indices = @transform_1, window_bounds = array<i64: 16, 128>}, {transform_indices = @transform_2, window_bounds = array<i64: 1, 3, 1, 128>}]} {
    %c0_i32 = arith.constant 0 : i32
    %0 = arith.cmpi eq, %arg1, %c0_i32 : i32
    %1 = arith.extui %0 : i1 to i32
    %c0_i32_0 = arith.constant 0 : i32
    %2 = arith.cmpi ne, %1, %c0_i32_0 : i32
    scf.if %2 {
      %cst_28 = arith.constant 0.000000e+00 : f32
      %30 = vector.broadcast %cst_28 : f32 to vector<1x3x1x128xf32>
      %c0_29 = arith.constant 0 : index
      %c0_30 = arith.constant 0 : index
      %c0_31 = arith.constant 0 : index
      %c0_32 = arith.constant 0 : index
      %31 = vector.load %arg4[%c0_29, %c0_30, %c0_31, %c0_32] : memref<1x3x1x128xf32, #tpu.memory_space<vmem>>, vector<1x3x1x128xf32>
      tpu.vector_store %arg4[%c0_29, %c0_30, %c0_31, %c0_32], %30 {strides = array<i32>} : memref<1x3x1x128xf32, #tpu.memory_space<vmem>>, vector<1x3x1x128xf32>,
    } else {
    }
    %c0 = arith.constant 0 : index
    %c0_1 = arith.constant 0 : index
    %3 = vector.load %arg2[%c0, %c0_1] : memref<16x128xf32, #tpu.memory_space<vmem>>, vector<16x128xf32>
    %c0_2 = arith.constant 0 : index
    %c0_3 = arith.constant 0 : index
    %4 = vector.load %arg3[%c0_2, %c0_3] : memref<16x128xf32, #tpu.memory_space<vmem>>, vector<16x128xf32>
    %c0_4 = arith.constant 0 : index
    %c0_5 = arith.constant 0 : index
    %c0_6 = arith.constant 0 : index
    %c0_7 = arith.constant 0 : index
    %5 = vector.load %arg4[%c0_4, %c0_5, %c0_6, %c0_7] : memref<1x3x1x128xf32, #tpu.memory_space<vmem>>, vector<1x1x1x128xf32>
    %6 = vector.shape_cast %5 : vector<1x1x1x128xf32> to vector<1x128xf32>
    %7 = arith.mulf %3, %4 : vector<16x128xf32>
    %cst = arith.constant dense<0.000000e+00> : vector<128xf32>
    %8 = vector.multi_reduction <add>, %7, %cst [0] : vector<16x128xf32> to vector<128xf32>
    %9 = vector.shape_cast %8 : vector<128xf32> to vector<1x128xf32>
    %10 = arith.addf %6, %9 : vector<1x128xf32>
    %c0_8 = arith.constant 0 : index
    %c0_9 = arith.constant 0 : index
    %c0_10 = arith.constant 0 : index
    %c0_11 = arith.constant 0 : index
    %11 = vector.load %arg4[%c0_8, %c0_9, %c0_10, %c0_11] : memref<1x3x1x128xf32, #tpu.memory_space<vmem>>, vector<1x1x1x128xf32>
    %12 = vector.shape_cast %11 : vector<1x1x1x128xf32> to vector<1x128xf32>
    %13 = vector.shape_cast %10 : vector<1x128xf32> to vector<1x1x1x128xf32>
    tpu.vector_store %arg4[%c0_8, %c0_9, %c0_10, %c0_11], %13 {strides = array<i32>} : memref<1x3x1x128xf32, #tpu.memory_space<vmem>>, vector<1x1x1x128xf32>,
    %c0_12 = arith.constant 0 : index
    %c1 = arith.constant 1 : index
    %c0_13 = arith.constant 0 : index
    %c0_14 = arith.constant 0 : index
    %14 = vector.load %arg4[%c0_12, %c1, %c0_13, %c0_14] : memref<1x3x1x128xf32, #tpu.memory_space<vmem>>, vector<1x1x1x128xf32>
    %15 = vector.shape_cast %14 : vector<1x1x1x128xf32> to vector<1x128xf32>
    %cst_15 = arith.constant dense<0.000000e+00> : vector<128xf32>
    %16 = vector.multi_reduction <add>, %3, %cst_15 [0] : vector<16x128xf32> to vector<128xf32>
    %17 = vector.shape_cast %16 : vector<128xf32> to vector<1x128xf32>
    %18 = arith.addf %15, %17 : vector<1x128xf32>
    %c0_16 = arith.constant 0 : index
    %c1_17 = arith.constant 1 : index
    %c0_18 = arith.constant 0 : index
    %c0_19 = arith.constant 0 : index
    %19 = vector.load %arg4[%c0_16, %c1_17, %c0_18, %c0_19] : memref<1x3x1x128xf32, #tpu.memory_space<vmem>>, vector<1x1x1x128xf32>
    %20 = vector.shape_cast %19 : vector<1x1x1x128xf32> to vector<1x128xf32>
    %21 = vector.shape_cast %18 : vector<1x128xf32> to vector<1x1x1x128xf32>
    tpu.vector_store %arg4[%c0_16, %c1_17, %c0_18, %c0_19], %21 {strides = array<i32>} : memref<1x3x1x128xf32, #tpu.memory_space<vmem>>, vector<1x1x1x128xf32>,
    %c0_20 = arith.constant 0 : index
    %c2 = arith.constant 2 : index
    %c0_21 = arith.constant 0 : index
    %c0_22 = arith.constant 0 : index
    %22 = vector.load %arg4[%c0_20, %c2, %c0_21, %c0_22] : memref<1x3x1x128xf32, #tpu.memory_space<vmem>>, vector<1x1x1x128xf32>
    %23 = vector.shape_cast %22 : vector<1x1x1x128xf32> to vector<1x128xf32>
    %cst_23 = arith.constant dense<0.000000e+00> : vector<128xf32>
    %24 = vector.multi_reduction <add>, %4, %cst_23 [0] : vector<16x128xf32> to vector<128xf32>
    %25 = vector.shape_cast %24 : vector<128xf32> to vector<1x128xf32>
    %26 = arith.addf %23, %25 : vector<1x128xf32>
    %c0_24 = arith.constant 0 : index
    %c2_25 = arith.constant 2 : index
    %c0_26 = arith.constant 0 : index
    %c0_27 = arith.constant 0 : index
    %27 = vector.load %arg4[%c0_24, %c2_25, %c0_26, %c0_27] : memref<1x3x1x128xf32, #tpu.memory_space<vmem>>, vector<1x1x1x128xf32>
    %28 = vector.shape_cast %27 : vector<1x1x1x128xf32> to vector<1x128xf32>
    %29 = vector.shape_cast %26 : vector<1x128xf32> to vector<1x1x1x128xf32>
    tpu.vector_store %arg4[%c0_24, %c2_25, %c0_26, %c0_27], %29 {strides = array<i32>} : memref<1x3x1x128xf32, #tpu.memory_space<vmem>>, vector<1x1x1x128xf32>,
    return
  }
  func.func @transform_0(%arg0: i32, %arg1: i32) -> (i32, i32) {
    %c1_i32 = arith.constant 1 : i32
    %0 = arith.muli %arg0, %c1_i32 : i32
    %1 = arith.addi %0, %arg1 : i32
    %c0_i32 = arith.constant 0 : i32
    %c0_i32_0 = arith.constant 0 : i32
    return %1, %c0_i32 : i32, i32
  }
  func.func @transform_1(%arg0: i32, %arg1: i32) -> (i32, i32) {
    %c1_i32 = arith.constant 1 : i32
    %0 = arith.muli %arg0, %c1_i32 : i32
    %1 = arith.addi %0, %arg1 : i32
    %c0_i32 = arith.constant 0 : i32
    %c0_i32_0 = arith.constant 0 : i32
    return %1, %c0_i32 : i32, i32
  }
  func.func @transform_2(%arg0: i32, %arg1: i32) -> (i32, i32, i32, i32) {
    %c0_i32 = arith.constant 0 : i32
    %c0_i32_0 = arith.constant 0 : i32
    %c0_i32_1 = arith.constant 0 : i32
    %c0_i32_2 = arith.constant 0 : i32
    return %arg0, %c0_i32, %c0_i32_0, %c0_i32_1 : i32, i32, i32, i32
  }
}

</mosaic_0001>

<bundles_post_ra>
// kernel: tpu_custom_call.1
= control target key start
LH: loop header
LB: loop body
LE: loop exit
PB: predicated region body
PF: predicated region fallthrough
CT: control target
= control target key end

     0   :  { %7 = vsyncpa [#allocation3], 0  ;;  %s239_s0 = inlined_call_operand.hbm [shape: f32[16,128], index: 0, kind: input, shape index: {}]   ;;  %s240_s1 = inlined_call_operand.hbm [shape: f32[16,128], index: 1, kind: input, shape index: {}]   ;;  %s241_s2 = inlined_call_operand.hbm [shape: f32[1,3,1,128], index: 2, kind: output, shape index: {}]  }
   0x1   :  { %8 = vsyncpa [#allocation6], 0 }
   0x2   :  { %9 = vsyncpa [#allocation4], 0  ;;  %s18_s11 = sshll.u32 %s239_s0, 4  ;;  %s207_s12 = smov [#allocation2]   ;;  %s19_s11 = int_to_ptr.hbm [resolvable:$true] %s18_s11 }
   0x3   :  { %s20_s13 = sshll.u32 %s207_s12, 4  ;;  %s35_s16 = sshll.u32 %s240_s1, 4  ;;  %s21_s13 = int_to_ptr.vmem [resolvable:$true] %s20_s13  ;;  %s36_s16 = int_to_ptr.hbm [resolvable:$true] %s35_s16 }
   0x4   :  { %s208_s17 = smov 128   ;;  %s209_s18 = smov 8  }
   0x5   :  { %26 = dma.hbm_to_vmem [thread:$0]  %s19_s11, 256, %s21_s13, [#allocation3], %s208_s17, %s208_s17, %s209_s18  }
   0x6   :  { %s210_s19 = smov [#allocation5]  }
   0x7   :  { %s37_s20 = sshll.u32 %s210_s19, 4  ;;  %s38_s20 = int_to_ptr.vmem [resolvable:$true] %s37_s20 }
   0x8   :  { %43 = dma.hbm_to_vmem [thread:$0]  %s36_s16, 256, %s38_s20, [#allocation6], %s208_s17, %s208_s17, %s209_s18  }
   0x9   :  { %201 = dma.done.wait [#allocation3], 256  }
   0xa   :  { %202 = vsyncadd [#allocation3], 4294967040 }
   0xb   :  { %203 = dma.done.wait [#allocation6], 256  }
   0xc   :  { %204 = vsyncadd [#allocation6], 4294967040  ;;  %v211_v0 = vmov 0.0   ;;  %v63_v1 = vld [vmem:[#allocation2] sm:$0xff]  ;;  %v64_v2 = vld [vmem:[#allocation2 + $0x8] sm:$0xff]  ;;  %s212_s0 = smov [#allocation7]  }
   0xd   :  { %60 = vst [vmem:[#allocation7] sm:$0x1] %v211_v0  ;;  %v65_v3 = vld [vmem:[#allocation5] sm:$0xff]  ;;  %v66_v4 = vld [vmem:[#allocation5 + $0x8] sm:$0xff]  ;;  %v81_v6 = vadd.f32 %v64_v2, %v63_v1  ;;  %s105_s1 = sshll.u32 %s212_s0, 4  ;;  %s107_s23 = sshll.u32 %s241_s2, 4  ;;  %s106_s1 = int_to_ptr.vmem [resolvable:$true] %s105_s1  ;;  %s108_s23 = int_to_ptr.hbm [resolvable:$true] %s107_s23 }
   0xe   :  { %61 = vst [vmem:[#allocation7 + $0x1] sm:$0x1] %v211_v0  ;;  %v68_v5 = vmul.f32 %v65_v3, %v63_v1  ;;  %v69_v7 = vmul.f32 %v66_v4, %v64_v2  ;;  %v92_v8 = vadd.f32 %v66_v4, %v65_v3  ;;  %s213_s24 = smov 16   ;;  %s214_s25 = smov 1  }
   0xf   :  { %62 = vst [vmem:[#allocation7 + $0x2] sm:$0x1] %v211_v0  ;;  %v82_v9 = vrot.slane %v81_v6, 4 }
  0x10   :  { %v70_v10 = vadd.f32 %v69_v7, %v68_v5  ;;  %v93_v11 = vrot.slane %v92_v8, 4 }
  0x11   :  { %v83_v12 = vadd.f32 %v82_v9, %v81_v6 }
  0x12   :  { %v71_v13 = vrot.slane %v70_v10, 4  ;;  %v94_v14 = vadd.f32 %v93_v11, %v92_v8 }
  0x13   :  { %v84_v15 = vrot.slane %v83_v12, 2 }
  0x14   :  { %v72_v16 = vadd.f32 %v71_v13, %v70_v10  ;;  %v95_v17 = vrot.slane %v94_v14, 2  ;;  %v67_v29 = vld [vmem:[#allocation7] sm:$0x1] }
  0x15   :  { %v85_v18 = vadd.f32 %v84_v15, %v83_v12  ;;  %v80_v23 = vld [vmem:[#allocation7 + $0x1] sm:$0x1] }
  0x16   :  { %v73_v19 = vrot.slane %v72_v16, 2  ;;  %v96_v20 = vadd.f32 %v95_v17, %v94_v14  ;;  %v91_v26 = vld [vmem:[#allocation7 + $0x2] sm:$0x1] }
  0x17   :  { %v86_v21 = vrot.slane %v85_v18, 1 }
  0x18   :  { %v74_v22 = vadd.f32 %v73_v19, %v72_v16  ;;  %v97_v24 = vrot.slane %v96_v20, 1 }
  0x19   :  { %v87_v25 = vadd.f32 %v86_v21, %v85_v18 }
  0x1a   :  { %v75_v27 = vrot.slane %v74_v22, 1  ;;  %v98_v28 = vadd.f32 %v97_v24, %v96_v20 }
  0x1b   :  { %v88_v30 = vadd.f32 %v87_v25, %v80_v23 }
  0x1c   :  { %v76_v31 = vadd.f32 %v75_v27, %v74_v22  ;;  %v99_v32 = vadd.f32 %v98_v28, %v91_v26 }
  0x1d   :  { %89 = vst [vmem:[#allocation7 + $0x1] sm:$0x1] %v88_v30 }
  0x1e   :  { %v77_v33 = vadd.f32 %v76_v31, %v67_v29  ;;  %100 = vst [vmem:[#allocation7 + $0x2] sm:$0x1] %v99_v32 }
  0x20   :  { %78 = vst [vmem:[#allocation7] sm:$0x1] %v77_v33 }
  0x21   :  { %113 = dma.vmem_to_hbm [thread:$0]  %s106_s1, 48, %s108_s23, [#allocation4], %s213_s24, %s213_s24, %s214_s25  }
  0x22   :  { %205 = dma.done.wait [#allocation4], 48  }
  0x23   :  { %206 = vsyncadd [#allocation4], 4294967248 }
  0x24   :  { %118 = vsyncpa [#allocation3], 1 }
  0x25   :  { %119 = vsyncpa [#allocation6], 1 }
  0x26   :  { %120 = vsyncpa [#allocation4], 1 }

</bundles_post_ra>
